<compile_context>
chip_gen: v5e
topology: v5e:2x2
jax: 0.10.0
libtpu: 0.0.40
codegen_flags: <defaults>
</compile_context>

<pallas_src>
import functools

import jax
import jax.numpy as jnp
from jax.experimental import pallas as pl
from jax.experimental.pallas import tpu as pltpu


def _round_up(x, m):
    return ((x + m - 1) // m) * m


def _loss_all_t_kernel(i_ref, dt_ref, beta_ref, out_ref, acc_ref, *,
                       n_rows, tile_rows, first_masked, may_mask):
    c = pl.program_id(0)            # parallel slice index
    i = pl.program_id(1)            # step within the slice
    inner = pl.num_programs(1)
    g = c * inner + i               # global row-tile index (may overshoot)

    @pl.when(i == 0)
    def _init():
        acc_ref[...] = jnp.zeros_like(acc_ref)

    # Dt @ beta on the MXU in native dtype, f32 accumulation.
    prod = jnp.dot(dt_ref[...], beta_ref[...],
                   preferred_element_type=jnp.float32)
    abs_resid = jnp.abs(i_ref[...].astype(jnp.float32) - prod)

    if may_mask:
        # Steady state: no iota/compare/select work.
        @pl.when(g < first_masked)
        def _steady():
            acc_ref[...] += jnp.sum(abs_resid, axis=0, keepdims=True)

        # Trailing partial tile / overshoot tiles only.
        @pl.when(g >= first_masked)
        def _edge():
            rows = (jax.lax.broadcasted_iota(jnp.int32, abs_resid.shape, 0)
                    + g * tile_rows)
            masked = jnp.where(rows < n_rows, abs_resid, 0.0)
            acc_ref[...] += jnp.sum(masked, axis=0, keepdims=True)
    else:
        acc_ref[...] += jnp.sum(abs_resid, axis=0, keepdims=True)

    @pl.when(i == inner - 1)
    def _finalize():
        # Single cross-lane reduce per slice; beta reduce done once per slice.
        loss1 = jnp.sum(acc_ref[...])
        loss2 = jnp.sum(jnp.abs(beta_ref[...].astype(jnp.float32)))
        row = jax.lax.broadcasted_iota(jnp.int32, (8, 128), 0)
        col = jax.lax.broadcasted_iota(jnp.int32, (8, 128), 1)
        blk = jnp.where((row == 0) & (col == 0), loss1, 0.0)
        blk = blk + jnp.where((row == 0) & (col == 1), loss2, 0.0)
        out_ref[0] = blk


def loss_all_t(I, Dt, beta, S=None, *, tile_rows=None, num_slices=None):
    """Pallas implementation of Loss_all_t.forward.

    I: (N, M), Dt: (N, K), beta: (K, M). `S` is unused by the reference
    forward and accepted only for signature compatibility.
    Returns (loss/N, loss1/N, loss2/N) as float32 scalars.
    """
    del S  # unused by the reference module
    N, M = I.shape
    K = Dt.shape[1]

    # --- generation-aware VMEM budget ---------------------------------------
    try:
        vmem_cap = int(pltpu.get_tpu_info().vmem_capacity_bytes)
    except Exception:  # pragma: no cover - conservative fallback (v7x per-TC)
        vmem_cap = 64 << 20

    beta_bytes = K * M * beta.dtype.itemsize
    bytes_per_row = M * I.dtype.itemsize + K * Dt.dtype.itemsize
    acc_bytes = 8 * max(M, 128) * 4          # padded (1, M) f32 accumulator

    headroom = 12 << 20                      # compiler scratch / outputs
    usable = max(vmem_cap - headroom, 16 << 20)
    # Per-step streamed bytes budget (I tile + Dt tile); x2 for double buffers.
    stream_budget = max(1 << 20,
                        (usable - 2 * beta_bytes - acc_bytes - (2 << 20)) // 2)
    target_bytes = min(16 << 20 if vmem_cap > (64 << 20) else 8 << 20,
                       stream_budget)

    # --- tile sizing: bytes-targeted, not row-capped -------------------------
    if tile_rows is None:
        tile_rows = (target_bytes // max(bytes_per_row, 1)) // 8 * 8
        tile_rows = int(min(max(tile_rows, 8), _round_up(N, 8)))
    tile_rows = max(8, (int(tile_rows) // 8) * 8)

    grid_n = pl.cdiv(N, tile_rows)
    # Leading parallel axis for v7x megacore; serialized (harmless) on 1-TC.
    if num_slices is None:
        num_slices = min(2, grid_n)
    num_slices = max(1, int(num_slices))
    inner = pl.cdiv(grid_n, num_slices)
    last_block = grid_n - 1

    first_masked = grid_n - 1 if (N % tile_rows) != 0 else grid_n
    may_mask = ((N % tile_rows) != 0) or (num_slices * inner != grid_n)

    # --- VMEM limit: true need + margin, capped below physical capacity -----
    tile_stream = tile_rows * bytes_per_row
    out_bytes = num_slices * 8 * 128 * 4
    need = 2 * tile_stream + 2 * beta_bytes + acc_bytes + 2 * out_bytes
    vmem_limit = max(need + (4 << 20), 32 << 20)
    vmem_limit = min(vmem_limit, vmem_cap - (8 << 20))
    vmem_limit = max(vmem_limit, need + (1 << 20))
    vmem_limit = int(min(vmem_limit, vmem_cap))

    kernel = functools.partial(
        _loss_all_t_kernel,
        n_rows=N, tile_rows=tile_rows,
        first_masked=first_masked, may_mask=may_mask)

    def _row_block(c, i):
        # Clamp overshoot tiles of the ragged slice split (masked to zero in
        # the kernel) so the DMA never walks off the array.
        return jnp.minimum(c * inner + i, last_block)

    # TODO(synk): for very large M, add an M grid axis (block beta as (K, TM),
    # I/acc as (tile_rows, TM)) so the resident working set stays bounded.
    # TODO(synk): optionally sweep pipeline_mode=pl.Buffered(3) on I/Dt specs
    # if profiles show exposed DMA at step boundaries.
    grid_spec = pltpu.PrefetchScalarGridSpec(
        num_scalar_prefetch=0,
        grid=(num_slices, inner),
        in_specs=[
            pl.BlockSpec((tile_rows, M), lambda c, i: (_row_block(c, i), 0)),
            pl.BlockSpec((tile_rows, K), lambda c, i: (_row_block(c, i), 0)),
            pl.BlockSpec((K, M), lambda c, i: (0, 0)),       # beta (resident)
        ],
        out_specs=pl.BlockSpec((1, 8, 128), lambda c, i: (c, 0, 0)),
        scratch_shapes=[pltpu.VMEM((1, M), jnp.float32)],
    )

    cost = pl.CostEstimate(
        flops=2 * N * K * M,
        transcendentals=0,
        bytes_accessed=(N * M * I.dtype.itemsize
                        + N * K * Dt.dtype.itemsize
                        + K * M * beta.dtype.itemsize
                        + out_bytes),
    )

    out = pl.pallas_call(
        kernel,
        out_shape=jax.ShapeDtypeStruct((num_slices, 8, 128), jnp.float32),
        grid_spec=grid_spec,
        compiler_params=pltpu.CompilerParams(
            dimension_semantics=("parallel", "arbitrary"),
            vmem_limit_bytes=vmem_limit,
        ),
        cost_estimate=cost,
    )(I, Dt, beta)

    loss1 = jnp.sum(out[:, 0, 0])     # per-slice partials summed here
    loss2 = out[0, 0, 1]              # identical in every slice; take slice 0
    inv_n = jnp.float32(1.0 / N)
    loss = (loss1 + 0.1 * loss2) * inv_n
    return loss, loss1 * inv_n, loss2 * inv_n


def loss_all_t_ref(I, Dt, beta):
    I = I.astype(jnp.float32)
    Dt = Dt.astype(jnp.float32)
    beta = beta.astype(jnp.float32)
    loss0 = I - Dt @ beta
    loss1 = jnp.sum(jnp.abs(loss0))
    loss2 = jnp.sum(jnp.abs(beta))
    loss = loss1 + 0.1 * loss2
    n = I.shape[0]
    return loss / n, loss1 / n, loss2 / n


if __name__ == "__main__":
    key = jax.random.PRNGKey(0)
    k1, k2, k3 = jax.random.split(key, 3)

    # Test 1: small single-tile path (auto tile sizing, no mask, 1 slice).
    N, K, M = 8, 32, 128
    I = jax.random.normal(k1, (N, M), dtype=jnp.float32)
    Dt = jax.random.normal(k2, (N, K), dtype=jnp.float32)
    beta = jax.random.normal(k3, (K, M), dtype=jnp.float32)

    got = loss_all_t(I, Dt, beta, S=None)
    jax.block_until_ready(got)
    want = loss_all_t_ref(I, Dt, beta)
    for g, w in zip(got, want):
        assert jnp.allclose(g, w, rtol=1e-4, atol=1e-3), (g, w)

    # Test 2: ragged N with forced tiny tiles -> 2-slice parallel split,
    # multi-step inner grid, trailing partial tile and overshoot-tile masking.
    N2, K2, M2 = 20, 32, 256
    I2 = jax.random.normal(k1, (N2, M2), dtype=jnp.float32)
    Dt2 = jax.random.normal(k2, (N2, K2), dtype=jnp.float32)
    beta2 = jax.random.normal(k3, (K2, M2), dtype=jnp.float32)

    got2 = loss_all_t(I2, Dt2, beta2, tile_rows=8)
    jax.block_until_ready(got2)
    want2 = loss_all_t_ref(I2, Dt2, beta2)
    for g, w in zip(got2, want2):
        assert jnp.allclose(g, w, rtol=1e-4, atol=1e-3), (g, w)

    print("KERNEL_OK")
</pallas_src>

<mosaic_0001>
module attributes {stable_mosaic.version = 11 : i64} {
  func.func @_loss_all_t_kernel(%arg0: i32, %arg1: i32, %arg2: memref<8x128xf32, #tpu.memory_space<vmem>>, %arg3: memref<8x32xf32, #tpu.memory_space<vmem>>, %arg4: memref<32x128xf32, #tpu.memory_space<vmem>>, %arg5: memref<1x8x128xf32, #tpu.memory_space<vmem>>, %arg6: memref<1x128xf32, #tpu.memory_space<vmem>>) attributes {dimension_semantics = [#tpu.dimension_semantics<parallel>, #tpu.dimension_semantics<arbitrary>], iteration_bounds = array<i64: 1, 1>, scalar_prefetch = 0 : i64, scratch_operands = 1 : i64, tpu.core_type = #tpu.core_type<tc>, window_params = [{transform_indices = @transform_0, window_bounds = array<i64: 8, 128>}, {transform_indices = @transform_1, window_bounds = array<i64: 8, 32>}, {pipeline_mode = #tpu.pipeline_mode<synchronous>, transform_indices = @transform_2, window_bounds = array<i64: 32, 128>}, {transform_indices = @transform_3, window_bounds = array<i64: 1, 8, 128>}]} {
    %c0_i32 = arith.constant 0 : i32
    %0 = arith.cmpi eq, %arg1, %c0_i32 : i32
    %1 = arith.extui %0 : i1 to i32
    %c0_i32_0 = arith.constant 0 : i32
    %2 = arith.cmpi ne, %1, %c0_i32_0 : i32
    scf.if %2 {
      %cst_13 = arith.constant 0.000000e+00 : f32
      %17 = vector.broadcast %cst_13 : f32 to vector<1x128xf32>
      %c0_14 = arith.constant 0 : index
      %c0_15 = arith.constant 0 : index
      %18 = vector.load %arg6[%c0_14, %c0_15] : memref<1x128xf32, #tpu.memory_space<vmem>>, vector<1x128xf32>
      tpu.vector_store %arg6[%c0_14, %c0_15], %17 {strides = array<i32>} : memref<1x128xf32, #tpu.memory_space<vmem>>, vector<1x128xf32>,
    } else {
    }
    %c0 = arith.constant 0 : index
    %c0_1 = arith.constant 0 : index
    %3 = vector.load %arg3[%c0, %c0_1] : memref<8x32xf32, #tpu.memory_space<vmem>>, vector<8x32xf32>
    %c0_2 = arith.constant 0 : index
    %c0_3 = arith.constant 0 : index
    %4 = vector.load %arg4[%c0_2, %c0_3] : memref<32x128xf32, #tpu.memory_space<vmem>>, vector<32x128xf32>
    %cst = arith.constant dense<0.000000e+00> : vector<8x128xf32>
    %5 = tpu.matmul %3, %4, %cst {dimension_numbers = #tpu.dot_dimension_numbers<[1], [0], [0], [1], [0, 0, 1, 1], [], []>} : vector<8x32xf32>, vector<32x128xf32>, vector<8x128xf32> -> vector<8x128xf32>
    %c0_4 = arith.constant 0 : index
    %c0_5 = arith.constant 0 : index
    %6 = vector.load %arg2[%c0_4, %c0_5] : memref<8x128xf32, #tpu.memory_space<vmem>>, vector<8x128xf32>
    %7 = arith.subf %6, %5 : vector<8x128xf32>
    %8 = math.absf %7 : vector<8x128xf32>
    %c0_6 = arith.constant 0 : index
    %c0_7 = arith.constant 0 : index
    %9 = vector.load %arg6[%c0_6, %c0_7] : memref<1x128xf32, #tpu.memory_space<vmem>>, vector<1x128xf32>
    %cst_8 = arith.constant dense<0.000000e+00> : vector<128xf32>
    %10 = vector.multi_reduction <add>, %8, %cst_8 [0] : vector<8x128xf32> to vector<128xf32>
    %11 = vector.shape_cast %10 : vector<128xf32> to vector<1x128xf32>
    %12 = arith.addf %9, %11 : vector<1x128xf32>
    %c0_9 = arith.constant 0 : index
    %c0_10 = arith.constant 0 : index
    %13 = vector.load %arg6[%c0_9, %c0_10] : memref<1x128xf32, #tpu.memory_space<vmem>>, vector<1x128xf32>
    tpu.vector_store %arg6[%c0_9, %c0_10], %12 {strides = array<i32>} : memref<1x128xf32, #tpu.memory_space<vmem>>, vector<1x128xf32>,
    %c0_i32_11 = arith.constant 0 : i32
    %14 = arith.cmpi eq, %arg1, %c0_i32_11 : i32
    %15 = arith.extui %14 : i1 to i32
    %c0_i32_12 = arith.constant 0 : i32
    %16 = arith.cmpi ne, %15, %c0_i32_12 : i32
    scf.if %16 {
      %c0_13 = arith.constant 0 : index
      %c0_14 = arith.constant 0 : index
      %17 = vector.load %arg6[%c0_13, %c0_14] : memref<1x128xf32, #tpu.memory_space<vmem>>, vector<1x128xf32>
      %18 = vector.shape_cast %17 : vector<1x128xf32> to vector<1x1x128xf32>
      %cst_15 = arith.constant dense<0.000000e+00> : vector<1xf32>
      %19 = vector.multi_reduction <add>, %18, %cst_15 [1, 2] : vector<1x1x128xf32> to vector<1xf32>
      %20 = vector.shape_cast %19 : vector<1xf32> to vector<1x1x1xf32>
      %21 = vector.extract %20[0, 0, 0] : f32 from vector<1x1x1xf32>
      %c0_16 = arith.constant 0 : index
      %c0_17 = arith.constant 0 : index
      %22 = vector.load %arg4[%c0_16, %c0_17] : memref<32x128xf32, #tpu.memory_space<vmem>>, vector<32x128xf32>
      %23 = math.absf %22 : vector<32x128xf32>
      %24 = vector.shape_cast %23 : vector<32x128xf32> to vector<1x32x128xf32>
      %cst_18 = arith.constant dense<0.000000e+00> : vector<1xf32>
      %25 = vector.multi_reduction <add>, %24, %cst_18 [1, 2] : vector<1x32x128xf32> to vector<1xf32>
      %26 = vector.shape_cast %25 : vector<1xf32> to vector<1x1x1xf32>
      %27 = vector.extract %26[0, 0, 0] : f32 from vector<1x1x1xf32>
      %28 = tpu.iota {dimensions = array<i32: 0>} : vector<8x128xi32>
      %29 = tpu.iota {dimensions = array<i32: 1>} : vector<8x128xi32>
      %c0_i32_19 = arith.constant 0 : i32
      %30 = vector.broadcast %c0_i32_19 : i32 to vector<8x128xi32>
      %31 = arith.cmpi eq, %28, %30 : vector<8x128xi32>
      %c0_i32_20 = arith.constant 0 : i32
      %32 = vector.broadcast %c0_i32_20 : i32 to vector<8x128xi32>
      %33 = arith.cmpi eq, %29, %32 : vector<8x128xi32>
      %34 = arith.andi %31, %33 : vector<8x128xi1>
      %cst_21 = arith.constant 0.000000e+00 : f32
      %35 = vector.broadcast %21 : f32 to vector<8x128xf32>
      %36 = vector.broadcast %cst_21 : f32 to vector<8x128xf32>
      %37 = arith.select %34, %35, %36 : vector<8x128xi1>, vector<8x128xf32>
      %c0_i32_22 = arith.constant 0 : i32
      %38 = vector.broadcast %c0_i32_22 : i32 to vector<8x128xi32>
      %39 = arith.cmpi eq, %28, %38 : vector<8x128xi32>
      %c1_i32 = arith.constant 1 : i32
      %40 = vector.broadcast %c1_i32 : i32 to vector<8x128xi32>
      %41 = arith.cmpi eq, %29, %40 : vector<8x128xi32>
      %42 = arith.andi %39, %41 : vector<8x128xi1>
      %cst_23 = arith.constant 0.000000e+00 : f32
      %43 = vector.broadcast %27 : f32 to vector<8x128xf32>
      %44 = vector.broadcast %cst_23 : f32 to vector<8x128xf32>
      %45 = arith.select %42, %43, %44 : vector<8x128xi1>, vector<8x128xf32>
      %46 = arith.addf %37, %45 : vector<8x128xf32>
      %c0_24 = arith.constant 0 : index
      %c0_25 = arith.constant 0 : index
      %c0_26 = arith.constant 0 : index
      %47 = vector.load %arg5[%c0_24, %c0_25, %c0_26] : memref<1x8x128xf32, #tpu.memory_space<vmem>>, vector<1x8x128xf32>
      %48 = vector.shape_cast %47 : vector<1x8x128xf32> to vector<8x128xf32>
      %49 = vector.shape_cast %46 : vector<8x128xf32> to vector<1x8x128xf32>
      tpu.vector_store %arg5[%c0_24, %c0_25, %c0_26], %49 {strides = array<i32>} : memref<1x8x128xf32, #tpu.memory_space<vmem>>, vector<1x8x128xf32>,
    } else {
    }
    return
  }
  func.func @transform_0(%arg0: i32, %arg1: i32) -> (i32, i32) {
    %c1_i32 = arith.constant 1 : i32
    %0 = arith.muli %arg0, %c1_i32 : i32
    %1 = arith.addi %0, %arg1 : i32
    %c0_i32 = arith.constant 0 : i32
    %2 = arith.minsi %1, %c0_i32 : i32
    %c0_i32_0 = arith.constant 0 : i32
    %c0_i32_1 = arith.constant 0 : i32
    return %2, %c0_i32_0 : i32, i32
  }
  func.func @transform_1(%arg0: i32, %arg1: i32) -> (i32, i32) {
    %c1_i32 = arith.constant 1 : i32
    %0 = arith.muli %arg0, %c1_i32 : i32
    %1 = arith.addi %0, %arg1 : i32
    %c0_i32 = arith.constant 0 : i32
    %2 = arith.minsi %1, %c0_i32 : i32
    %c0_i32_0 = arith.constant 0 : i32
    %c0_i32_1 = arith.constant 0 : i32
    return %2, %c0_i32_0 : i32, i32
  }
  func.func @transform_2(%arg0: i32, %arg1: i32) -> (i32, i32) {
    %c0_i32 = arith.constant 0 : i32
    %c0_i32_0 = arith.constant 0 : i32
    %c0_i32_1 = arith.constant 0 : i32
    return %c0_i32, %c0_i32_0 : i32, i32
  }
  func.func @transform_3(%arg0: i32, %arg1: i32) -> (i32, i32, i32) {
    %c0_i32 = arith.constant 0 : i32
    %c0_i32_0 = arith.constant 0 : i32
    %c0_i32_1 = arith.constant 0 : i32
    return %arg0, %c0_i32, %c0_i32_0 : i32, i32, i32
  }
}

</mosaic_0001>

<bundles_post_ra>
// kernel: tpu_custom_call.1
= control target key start
LH: loop header
LB: loop body
LE: loop exit
PB: predicated region body
PF: predicated region fallthrough
CT: control target
= control target key end

     0   :  { %8 = vsyncpa [#allocation4], 0  ;;  %s345_s0 = inlined_call_operand.hbm [shape: f32[8,128], index: 0, kind: input, shape index: {}]   ;;  %s346_s1 = inlined_call_operand.hbm [shape: f32[8,32], index: 1, kind: input, shape index: {}]   ;;  %s347_s2 = inlined_call_operand.hbm [shape: f32[32,128], index: 2, kind: input, shape index: {}]   ;;  %s348_s3 = inlined_call_operand.hbm [shape: f32[1,8,128], index: 3, kind: output, shape index: {}]  }
   0x1   :  { %9 = vsyncpa [#allocation7], 0  ;;  %s37_s14 = sshll.u32 %s346_s1, 4  ;;  %s38_s14 = int_to_ptr.hbm [resolvable:$true] %s37_s14 }
   0x2   :  { %10 = vsyncpa [#allocation5], 0  ;;  %s306_s15 = smov [#allocation6]   ;;  %s21_s19 = sshll.u32 %s345_s0, 4  ;;  %s22_s19 = int_to_ptr.hbm [resolvable:$true] %s21_s19 }
   0x3   :  { %s39_s16 = sshll.u32 %s306_s15, 4  ;;  %s307_s20 = smov [#allocation3]   ;;  %s40_s16 = int_to_ptr.vmem [resolvable:$true] %s39_s16 }
   0x4   :  { %42 = dma.hbm_to_vmem [thread:$0]  %s38_s14, 128, %s40_s16, [#allocation7]  }
   0x5   :  { %s23_s21 = sshll.u32 %s307_s20, 4  ;;  %s47_s24 = sshll.u32 %s347_s2, 4  ;;  %s24_s21 = int_to_ptr.vmem [resolvable:$true] %s23_s21  ;;  %s48_s24 = int_to_ptr.hbm [resolvable:$true] %s47_s24 }
   0x6   :  { %26 = dma.hbm_to_vmem [thread:$0]  %s22_s19, 128, %s24_s21, [#allocation4]  }
   0x7   :  { %s308_s1 = smov [#allocation8]   ;;  %s309_s26 = smov 128  }
   0x8   :  { %s49_s25 = sshll.u32 %s308_s1, 4  ;;  %s310_s27 = smov 8   ;;  %s50_s25 = int_to_ptr.vmem [resolvable:$true] %s49_s25 }
   0x9   :  { %55 = dma.hbm_to_vmem [thread:$0]  %s48_s24, 512, %s50_s25, [#allocation7], %s309_s26, %s309_s26, %s310_s27  }
   0xa   :  { %300 = dma.done.wait [#allocation4], 128  }
   0xb   :  { %301 = vsyncadd [#allocation4], 4294967168 }
   0xc   :  { %302 = dma.done.wait [#allocation7], 640  }
   0xd   :  { %303 = vsyncadd [#allocation7], 4294966656  ;;  %v311_v0 = vmov 0.0   ;;  %v83_v1 = vld [vmem:[#allocation8 + $0x18] sm:$0xff]  ;;  %v82_v2 = vld [vmem:[#allocation8 + $0x10] sm:$0xff]  ;;  %vm84_vm0 = vcmask 261120   ;;  %v155_v41 = vlaneseq }
   0xe   :  { %78 = vst [vmem:[#allocation2] sm:$0x1] %v311_v0  ;;  %100 = vmatpush.msra.mxu0 %v83_v1  ;;  %v81_v3 = vld [vmem:[#allocation8 + $0x8] sm:$0xff]  ;;  %v80_v4 = vld [vmem:[#allocation8] sm:$0xff]  ;;  %v79_v5 = vld [vmem:[#allocation6] sm:$0xff]  ;;  %vm124_vm1 = vcmask 1040384  }
   0xf   :  { %v108_v6 = vld [vmem:[#allocation3] sm:$0xff]  ;;  %v139_v18 = vand.u32 2147483647, %v80_v4  ;;  %v140_v19 = vand.u32 2147483647, %v81_v3  ;;  %v156_v42 = vshrl.u32 %v155_v41, 7 }
  0x10   :  { %101 = vmatpush.msra.mxu0 %v82_v2  ;;  %v141_v20 = vand.u32 2147483647, %v82_v2  ;;  %v142_v24 = vand.u32 2147483647, %v83_v1  ;;  %v158_v43 = vand.u32 127, %v155_v41  ;;  %s312_s2 = smov [#allocation9]  }
  0x11   :  { %v143_v21 = vadd.f32 %v140_v19, %v139_v18  ;;  %vm159_vm2 = vcmp.eq.s32.totalorder %v156_v42, 0  ;;  %s175_s28 = sshll.u32 %s312_s2, 4  ;;  %s177_s5 = sshll.u32 %s348_s3, 4  ;;  %s176_s28 = int_to_ptr.vmem [resolvable:$true] %s175_s28  ;;  %s178_s5 = int_to_ptr.hbm [resolvable:$true] %s177_s5 }
  0x12   :  { %102 = vmatpush.msra.mxu0 %v81_v3  ;;  %vm160_vm3 = vcmp.eq.s32.totalorder %v158_v43, 0  ;;  %vm164_vm4 = vcmp.eq.s32.totalorder %v158_v43, 1 }
  0x13   :  { %v144_v25 = vadd.f32 %v143_v21, %v141_v20  ;;  %vm161_vm5 = vmand %vm159_vm2, %vm160_vm3 }
  0x14   :  { %103 = vmatpush.msra.mxu0 %v80_v4  ;;  %vm165_vm6 = vmand %vm159_vm2, %vm164_vm4 }
  0x15   :  { %192 = vmatmul.msk.f32.vlgmr.msra.gmra.mxu0 %vm84_vm0, %v79_v5  ;;  %v111_v15 = vld [vmem:[#allocation2] sm:$0x1]  ;;  %v145_v26 = vadd.f32 %v144_v25, %v142_v24 }
  0x92   :  { %v105_v7 = vpop.f32.mrf.mxu0 }
  0x93   :  { %v109_v8 = vsub.f32 %v108_v6, %v105_v7 }
  0x95   :  { %v110_v9 = vand.u32 2147483647, %v109_v8 }
  0x97   :  { %v112_v10 = vrot.slane %v110_v9, 4 }
  0x99   :  { %v113_v11 = vadd.f32 %v112_v10, %v110_v9 }
  0x9b   :  { %v114_v12 = vrot.slane %v113_v11, 2 }
  0x9d   :  { %v115_v13 = vadd.f32 %v114_v12, %v113_v11 }
  0x9f   :  { %v116_v14 = vrot.slane %v115_v13, 1 }
  0xa1   :  { %v117_v16 = vadd.f32 %v116_v14, %v115_v13 }
  0xa3   :  { %v118_v17 = vadd.f32 %v117_v16, %v111_v15 }
  0xa5   :  { %119 = vst [vmem:[#allocation2] sm:$0x1] %v118_v17 }
  0xac   :  { %v123_v22 = vld [vmem:[#allocation2] sm:$0x1] }
  0xad   :  { %v125_v23 = vsel %vm124_vm1, %v123_v22, 0.0 }
  0xae   :  { %126 = vadd.xlane.f32.xlu0 %v125_v23 }
  0xb6   :  { %146 = vadd.xlane.f32.xlu0 %v145_v26 }
 0x121   :  { %v127_v27 = vpop.xlane.xlu0 %126 }
 0x122   :  { %v128_v28 = vrot.slane %v127_v27, 4 }
 0x124   :  { %v129_v29 = vadd.f32 %v128_v28, %v127_v27 }
 0x126   :  { %v130_v30 = vrot.slane %v129_v29, 2 }
 0x128   :  { %v131_v31 = vadd.f32 %v130_v30, %v129_v29 }
 0x129   :  { %v147_v32 = vpop.xlane.xlu0 %146 }
 0x12a   :  { %v148_v33 = vrot.slane %v147_v32, 4  ;;  %v132_v34 = vrot.slane %v131_v31, 1 }
 0x12c   :  { %v149_v35 = vadd.f32 %v148_v33, %v147_v32  ;;  %v133_v36 = vadd.f32 %v132_v34, %v131_v31 }
 0x12e   :  { %v150_v37 = vrot.slane %v149_v35, 2  ;;  %193 = vpush %v133_v36 }
 0x130   :  { %v151_v38 = vadd.f32 %v150_v37, %v149_v35 }
 0x132   :  { %v152_v39 = vrot.slane %v151_v38, 1 }
 0x134   :  { %v153_v40 = vadd.f32 %v152_v39, %v151_v38 }
 0x136   :  { %195 = vpush %v153_v40 }
 0x15f   :  { %s194_s0 = spop %193 }
 0x160   :  { %v162_v44 = vstv %s194_s0 }
 0x161   :  { %v163_v46 = vsel %vm161_vm5, %v162_v44, 0.0 }
 0x167   :  { %s196_s29 = spop %195 }
 0x168   :  { %v166_v45 = vstv %s196_s29 }
 0x169   :  { %v167_v47 = vsel %vm165_vm6, %v166_v45, 0.0 }
 0x16a   :  { %v168_v48 = vadd.f32 %v167_v47, %v163_v46 }
 0x16c   :  { %169 = vst [vmem:[#allocation9] sm:$0xff] %v168_v48 }
 0x16d   :  { %180 = dma.vmem_to_hbm [thread:$0]  %s176_s28, 128, %s178_s5, [#allocation5]  }
 0x16e   :  { %304 = dma.done.wait [#allocation5], 128  }
 0x16f   :  { %305 = vsyncadd [#allocation5], 4294967168 }
 0x170   :  { %185 = vsyncpa [#allocation4], 1 }
 0x171   :  { %186 = vsyncpa [#allocation7], 1 }
 0x172   :  { %187 = vsyncpa [#allocation5], 1 }

</bundles_post_ra>
